<compile_context>
chip_gen: v6e
topology: v6e:2x2x1
jax: 0.10.0
libtpu: 0.0.40
codegen_flags: <defaults>
</compile_context>

<pallas_src>
import math

import jax
import jax.numpy as jnp
from jax.experimental import pallas as pl
from jax.experimental.pallas import tpu as pltpu

A = 13.0
S = 1.7
INV_S = 1.0 / S
C0 = (A / (1.0 + A)) ** (1.0 / A)                  # np.power(a/(1+a), 1/a)
K_PAD = C0 ** (-A) + (1.0 + A) * math.log(C0)      # contribution of one padded elem (diff == 0)

LANES = 128
SUBLANES = 8
MAX_ROW_TILE = 2048     # (2048, 128) f32 = 1 MiB/tile; 2 inputs x 2 buffers = 4 MiB VMEM


def _round_up(x, m):
    return ((x + m - 1) // m) * m


def _fgelv_partial_kernel(pred_ref, target_ref, out_ref):
    # Cast after the block load: HBM traffic stays in the native input dtype.
    p = pred_ref[...].astype(jnp.float32)
    t = target_ref[...].astype(jnp.float32)

    temp = jnp.abs(p - t) * jnp.float32(INV_S) + jnp.float32(C0)   # strictly > 0
    log_t = jnp.log(temp)                                          # single EUP log
    inv_t = pl.reciprocal(temp, approx=False)                      # exact reciprocal
    # temp^-13 via squarings (13 = 8 + 4 + 1): pure VPU multiplies, no pow/exp.
    i2 = inv_t * inv_t
    i4 = i2 * i2
    i8 = i4 * i4
    inv_t13 = i8 * i4 * inv_t

    val = inv_t13 + jnp.float32(1.0 + A) * log_t                   # (row_tile, 128)

    # Sublane-group partial reduction: add vregs element-wise -> (8, 128).
    row_tile = val.shape[0]
    partial = jnp.sum(val.reshape(row_tile // SUBLANES, SUBLANES, LANES), axis=0)
    out_ref[...] = partial[None, :, :]


def fgelv_loss(pred, target):
    """Pallas TPU implementation of FGELV.forward. Returns a scalar float32."""
    assert pred.shape == target.shape
    total = pred.size

    rows = max(1, -(-total // LANES))                 # ceil(total / 128)
    row_tile = min(MAX_ROW_TILE, _round_up(rows, SUBLANES))
    padded_rows = _round_up(rows, row_tile)
    padded_total = padded_rows * LANES
    n_pad = padded_total - total
    grid = padded_rows // row_tile

    def _prep(x):
        flat = x.reshape(-1)
        if n_pad:
            # pad value 0 in BOTH inputs -> diff == 0 -> each padded element
            # contributes exactly K_PAD, which is subtracted in the wrapper.
            flat = jnp.pad(flat, (0, n_pad))
        return flat.reshape(padded_rows, LANES)

    p2 = _prep(pred)
    t2 = _prep(target)

    elem_bytes = jnp.dtype(pred.dtype).itemsize + jnp.dtype(target.dtype).itemsize
    partials = pl.pallas_call(
        _fgelv_partial_kernel,
        out_shape=jax.ShapeDtypeStruct((grid, SUBLANES, LANES), jnp.float32),
        grid_spec=pltpu.PrefetchScalarGridSpec(
            num_scalar_prefetch=0,
            grid=(grid,),
            in_specs=[
                pl.BlockSpec((row_tile, LANES), lambda i: (i, 0)),
                pl.BlockSpec((row_tile, LANES), lambda i: (i, 0)),
            ],
            out_specs=pl.BlockSpec((1, SUBLANES, LANES), lambda i: (i, 0, 0)),
        ),
        compiler_params=pltpu.CompilerParams(
            dimension_semantics=("parallel",),          # each step owns its output block
            vmem_limit_bytes=32 * 1024 * 1024,          # ~5 MiB used; safe on v5e/v6e/v7x
        ),
        cost_estimate=pl.CostEstimate(
            flops=12 * padded_total,
            transcendentals=2 * padded_total,
            bytes_accessed=elem_bytes * padded_total + 4 * grid * SUBLANES * LANES,
        ),
    )(p2, t2)

    total_sum = jnp.sum(partials, dtype=jnp.float32)
    # Remove the constant contribution of padded elements, then take the mean.
    return (total_sum - jnp.float32(n_pad * K_PAD)) / jnp.float32(total)


def _fgelv_ref(pred, target):
    temp = jnp.abs(pred.astype(jnp.float32) - target.astype(jnp.float32)) / S + C0
    return jnp.mean(temp ** (-A) + (1.0 + A) * jnp.log(temp))


if __name__ == "__main__":
    key = jax.random.PRNGKey(0)
    k1, k2 = jax.random.split(key)
    # NCHW inputs: batch=2, channels=4, spatial=16x16 -> 2048 elements
    pred = jax.random.normal(k1, (2, 4, 16, 16), dtype=jnp.float32)
    target = jax.random.normal(k2, (2, 4, 16, 16), dtype=jnp.float32)

    loss = jax.block_until_ready(fgelv_loss(pred, target))
    ref = jax.block_until_ready(_fgelv_ref(pred, target))

    assert jnp.allclose(loss, ref, rtol=1e-5, atol=1e-5), (loss, ref)
    print("KERNEL_OK")
</pallas_src>

<mosaic_0001>
module attributes {stable_mosaic.version = 11 : i64} {
  func.func @_fgelv_partial_kernel(%arg0: i32, %arg1: memref<16x128xf32, #tpu.memory_space<vmem>>, %arg2: memref<16x128xf32, #tpu.memory_space<vmem>>, %arg3: memref<1x8x128xf32, #tpu.memory_space<vmem>>) attributes {dimension_semantics = [#tpu.dimension_semantics<parallel>], iteration_bounds = array<i64: 1>, scalar_prefetch = 0 : i64, scratch_operands = 0 : i64, tpu.core_type = #tpu.core_type<tc>, window_params = [{transform_indices = @transform_0, window_bounds = array<i64: 16, 128>}, {transform_indices = @transform_1, window_bounds = array<i64: 16, 128>}, {transform_indices = @transform_2, window_bounds = array<i64: 1, 8, 128>}]} {
    %c0 = arith.constant 0 : index
    %c0_0 = arith.constant 0 : index
    %0 = vector.load %arg1[%c0, %c0_0] : memref<16x128xf32, #tpu.memory_space<vmem>>, vector<16x128xf32>
    %c0_1 = arith.constant 0 : index
    %c0_2 = arith.constant 0 : index
    %1 = vector.load %arg2[%c0_1, %c0_2] : memref<16x128xf32, #tpu.memory_space<vmem>>, vector<16x128xf32>
    %2 = arith.subf %0, %1 : vector<16x128xf32>
    %3 = math.absf %2 : vector<16x128xf32>
    %cst = arith.constant 0.588235319 : f32
    %4 = vector.broadcast %cst : f32 to vector<16x128xf32>
    %5 = arith.mulf %3, %4 : vector<16x128xf32>
    %cst_3 = arith.constant 0.994315624 : f32
    %6 = vector.broadcast %cst_3 : f32 to vector<16x128xf32>
    %7 = arith.addf %5, %6 : vector<16x128xf32>
    %8 = math.log %7 : vector<16x128xf32>
    %9 = tpu.reciprocal %7 : vector<16x128xf32> -> vector<16x128xf32>
    %10 = arith.mulf %9, %9 : vector<16x128xf32>
    %11 = arith.mulf %10, %10 : vector<16x128xf32>
    %12 = arith.mulf %11, %11 : vector<16x128xf32>
    %13 = arith.mulf %12, %11 : vector<16x128xf32>
    %14 = arith.mulf %13, %9 : vector<16x128xf32>
    %cst_4 = arith.constant 1.400000e+01 : f32
    %15 = vector.broadcast %cst_4 : f32 to vector<16x128xf32>
    %16 = arith.mulf %15, %8 : vector<16x128xf32>
    %17 = arith.addf %14, %16 : vector<16x128xf32>
    %18 = vector.shape_cast %17 : vector<16x128xf32> to vector<2x8x128xf32>
    %cst_5 = arith.constant dense<0.000000e+00> : vector<8x128xf32>
    %19 = vector.multi_reduction <add>, %18, %cst_5 [0] : vector<2x8x128xf32> to vector<8x128xf32>
    %20 = vector.shape_cast %19 : vector<8x128xf32> to vector<1x8x128xf32>
    %c0_6 = arith.constant 0 : index
    %c0_7 = arith.constant 0 : index
    %c0_8 = arith.constant 0 : index
    %21 = vector.load %arg3[%c0_6, %c0_7, %c0_8] : memref<1x8x128xf32, #tpu.memory_space<vmem>>, vector<1x8x128xf32>
    tpu.vector_store %arg3[%c0_6, %c0_7, %c0_8], %20 {strides = array<i32>} : memref<1x8x128xf32, #tpu.memory_space<vmem>>, vector<1x8x128xf32>,
    return
  }
  func.func @transform_0(%arg0: i32) -> (i32, i32) {
    %c0_i32 = arith.constant 0 : i32
    %c0_i32_0 = arith.constant 0 : i32
    return %arg0, %c0_i32 : i32, i32
  }
  func.func @transform_1(%arg0: i32) -> (i32, i32) {
    %c0_i32 = arith.constant 0 : i32
    %c0_i32_0 = arith.constant 0 : i32
    return %arg0, %c0_i32 : i32, i32
  }
  func.func @transform_2(%arg0: i32) -> (i32, i32, i32) {
    %c0_i32 = arith.constant 0 : i32
    %c0_i32_0 = arith.constant 0 : i32
    %c0_i32_1 = arith.constant 0 : i32
    return %arg0, %c0_i32, %c0_i32_0 : i32, i32, i32
  }
}

</mosaic_0001>

<bundles_post_ra>
// kernel: tpu_custom_call.1
= control target key start
LH: loop header
LB: loop body
LE: loop exit
PB: predicated region body
PF: predicated region fallthrough
CT: control target
= control target key end

     0   :  { %7 = vsyncpa [#allocation3], 0  ;;  %s198_s0 = inlined_call_operand.hbm [shape: f32[16,128], index: 0, kind: input, shape index: {}]   ;;  %s199_s1 = inlined_call_operand.hbm [shape: f32[16,128], index: 1, kind: input, shape index: {}]   ;;  %s200_s2 = inlined_call_operand.hbm [shape: f32[1,8,128], index: 2, kind: output, shape index: {}]  }
   0x1   :  { %8 = vsyncpa [#allocation6], 0 }
   0x2   :  { %9 = vsyncpa [#allocation4], 0  ;;  %s169_s9 = smov [#allocation2]  }
   0x3   :  { %s15_s10 = sshll.u32 %s169_s9, 4  ;;  %s16_s10 = int_to_ptr.vmem [resolvable:$true] %s15_s10 }
   0x4   :  { %s111_s11 = scalar_lea.vmem %s16_s10, 256  ;;  %p116_p1 = scmp.lt.s32.totalorder %s16_s10, %s16_s10 }
   0x5   :  { %p112_p0 = scmp.ne.s32.totalorder %s16_s10, %s111_s11  ;;  %p117_p2 = scmp.lt.s32.totalorder %s111_s11, %s111_s11 }
   0x7   :  { %p118_p3 = por %p117_p2, %p116_p1 }
   0x9   :  { %p119_p4 = pnand %p118_p3, %p112_p0 }
   0xb   :  { %122 = shalt.err (!%p119_p4)
}
   0xc   :  { %s170_s12 = smov 128   ;;  %s171_s13 = smov 8  }
   0xd   :  { %21 = dma.hbm_to_vmem [thread:$0]  %s198_s0, 256, %s16_s10, [#allocation3], %s170_s12, %s170_s12, %s171_s13  }
   0xe   :  { %s172_s16 = smov [#allocation5]  }
   0xf   :  { %s27_s17 = sshll.u32 %s172_s16, 4  ;;  %s28_s17 = int_to_ptr.vmem [resolvable:$true] %s27_s17 }
  0x10   :  { %s131_s18 = scalar_lea.vmem %s28_s17, 256  ;;  %p136_p6 = scmp.lt.s32.totalorder %s28_s17, %s28_s17 }
  0x11   :  { %p132_p5 = scmp.ne.s32.totalorder %s28_s17, %s131_s18  ;;  %p137_p7 = scmp.lt.s32.totalorder %s131_s18, %s131_s18 }
  0x13   :  { %p138_p8 = por %p137_p7, %p136_p6 }
  0x15   :  { %p139_p9 = pnand %p138_p8, %p132_p5 }
  0x17   :  { %142 = shalt.err (!%p139_p9)
}
  0x18   :  { %33 = dma.hbm_to_vmem [thread:$0]  %s199_s1, 256, %s28_s17, [#allocation6], %s170_s12, %s170_s12, %s171_s13  }
  0x19   :  { %163 = dma.done.wait [#allocation3], 256  }
  0x1a   :  { %164 = vsyncadd [#allocation3], 4294967040 }
  0x1b   :  { %165 = dma.done.wait [#allocation6], 256  }
  0x1c   :  { %166 = vsyncadd [#allocation6], 4294967040  ;;  %v40_v0 = vld [vmem:[#allocation2] sm:$0xff]  ;;  %v41_v1 = vld [vmem:[#allocation2 + $0x8] sm:$0xff]  ;;  %s173_s0 = smov [#allocation7]  }
  0x1d   :  { %v42_v2 = vld [vmem:[#allocation5] sm:$0xff]  ;;  %v43_v3 = vld [vmem:[#allocation5 + $0x8] sm:$0xff]  ;;  %s80_s1 = sshll.u32 %s173_s0, 4  ;;  %s81_s1 = int_to_ptr.vmem [resolvable:$true] %s80_s1 }
  0x1e   :  { %v44_v4 = vsub.f32 %v40_v0, %v42_v2  ;;  %v45_v5 = vsub.f32 %v41_v1, %v43_v3  ;;  %s143_s21 = scalar_lea.vmem %s81_s1, 128  ;;  %p148_p11 = scmp.lt.s32.totalorder %s81_s1, %s81_s1 }
  0x1f   :  { %p144_p10 = scmp.ne.s32.totalorder %s81_s1, %s143_s21  ;;  %p149_p12 = scmp.lt.s32.totalorder %s143_s21, %s143_s21 }
  0x20   :  { %v46_v6 = vand.u32 2147483647, %v44_v4  ;;  %v47_v7 = vand.u32 2147483647, %v45_v5 }
  0x21   :  { %p150_p13 = por %p149_p12, %p148_p11 }
  0x22   :  { %v48_v8 = vmul.f32 0.5882353, %v46_v6  ;;  %v49_v9 = vmul.f32 0.5882353, %v47_v7 }
  0x23   :  { %p151_p0 = pnand %p150_p13, %p144_p10 }
  0x24   :  { %v50_v10 = vadd.f32 0.9943156, %v48_v8  ;;  %v51_v11 = vadd.f32 0.9943156, %v49_v9 }
  0x26   :  { %95 = vlog2.f32 %v50_v10 }
  0x27   :  { %97 = vlog2.f32 %v51_v11 }
  0x28   :  { %99 = vrcp.f32 %v50_v10 }
  0x29   :  { %101 = vrcp.f32 %v51_v11 }
  0x33   :  { %v96_v12 = vpop.eup %95 }
  0x34   :  { %v98_v13 = vpop.eup %97  ;;  %v53_v18 = vmul.f32 0.6931472, %v96_v12 }
  0x35   :  { %v100_v14 = vpop.eup %99  ;;  %v55_v20 = vmul.f32 0.6931472, %v98_v13 }
  0x36   :  { %v102_v15 = vpop.eup %101  ;;  %v58_v16 = vmul.f32 %v100_v14, %v100_v14  ;;  %v68_v25 = vmul.f32 14.0, %v53_v18 }
  0x37   :  { %v59_v17 = vmul.f32 %v102_v15, %v102_v15  ;;  %v69_v27 = vmul.f32 14.0, %v55_v20 }
  0x38   :  { %v60_v19 = vmul.f32 %v58_v16, %v58_v16 }
  0x39   :  { %v61_v21 = vmul.f32 %v59_v17, %v59_v17 }
  0x3a   :  { %v62_v22 = vmul.f32 %v60_v19, %v60_v19 }
  0x3b   :  { %v63_v23 = vmul.f32 %v61_v21, %v61_v21 }
  0x3c   :  { %v64_v24 = vmul.f32 %v62_v22, %v60_v19 }
  0x3d   :  { %v65_v26 = vmul.f32 %v63_v23, %v61_v21 }
  0x3e   :  { %v66_v28 = vmul.f32 %v100_v14, %v64_v24 }
  0x3f   :  { %v67_v29 = vmul.f32 %v102_v15, %v65_v26 }
  0x40   :  { %v70_v30 = vadd.f32 %v68_v25, %v66_v28 }
  0x41   :  { %v71_v31 = vadd.f32 %v69_v27, %v67_v29 }
  0x43   :  { %v72_v32 = vadd.f32 %v71_v31, %v70_v30 }
  0x45   :  { %73 = vst [vmem:[#allocation7] sm:$0xff] %v72_v32 }
  0x46   :  { %154 = shalt.err (!%p151_p0)
}
  0x47   :  { %83 = dma.vmem_to_hbm [thread:$0]  %s81_s1, 128, %s200_s2, [#allocation4]  }
  0x48   :  { %167 = dma.done.wait [#allocation4], 128  }
  0x49   :  { %168 = vsyncadd [#allocation4], 4294967168 }
  0x4a   :  { %87 = vsyncpa [#allocation3], 1 }
  0x4b   :  { %88 = vsyncpa [#allocation6], 1 }
  0x4c   :  { %89 = vsyncpa [#allocation4], 1 }

</bundles_post_ra>
